<compile_context>
chip_gen: v6e
topology: v6e:2x2x1
jax: 0.10.0
libtpu: 0.0.40
codegen_flags: <defaults>
</compile_context>

<pallas_src>
import functools

import jax
import jax.numpy as jnp
from jax.experimental import pallas as pl
from jax.experimental.pallas import tpu as pltpu

_VMEM_LIMIT = 32 * 1024 * 1024  # safe on v5e/v6e/v7x, above v5e's 16 MiB default


# ---------------------------------------------------------------------------
# Kernel 1: masked cross-entropy over (B, K, V), labels 0 == ignore
# ---------------------------------------------------------------------------
def _masked_ce_kernel(fuse_ref, gt_ref, sum_ref, cnt_ref, acc_ref, cnt_acc_ref,
                      *, v_total, mask_cols):
    v = pl.program_id(1)

    @pl.when(v == 0)
    def _init():
        acc_ref[...] = jnp.zeros_like(acc_ref)
        cnt_acc_ref[...] = jnp.zeros_like(cnt_acc_ref)

    logits = fuse_ref[0].astype(jnp.float32)       # (K, VT)  classes on sublanes
    labels = gt_ref[0]                             # (1, VT)  int32
    k, vt = logits.shape

    # stable log-softmax over the class (sublane) axis
    m = jnp.max(logits, axis=0, keepdims=True)                      # (1, VT)
    lse = m + jnp.log(jnp.sum(jnp.exp(logits - m), axis=0, keepdims=True))

    # target logit gather: K row-selects at full lane occupancy
    row = jax.lax.broadcasted_iota(jnp.int32, (k, vt), 0)
    tgt = labels - 1                                                # (1, VT)
    tgt_logit = jnp.sum(jnp.where(row == tgt, logits, 0.0),
                        axis=0, keepdims=True)                      # (1, VT)

    valid = labels > 0                                              # (1, VT)
    if mask_cols:                                                   # tail tile
        col = jax.lax.broadcasted_iota(jnp.int32, (1, vt), 1) + v * vt
        valid = valid & (col < v_total)

    nll = jnp.where(valid, lse - tgt_logit, 0.0)                    # (1, VT)
    acc_ref[...] += nll                                             # VPU only
    cnt_acc_ref[...] += valid.astype(jnp.int32)

    @pl.when(v == pl.num_programs(1) - 1)
    def _fin():                                                     # epilogue reduce
        sum_ref[...] = jnp.sum(acc_ref[...]).reshape(1, 1, 1)
        cnt_ref[...] = jnp.sum(cnt_acc_ref[...]).reshape(1, 1, 1)


def masked_cross_entropy(fuse, gt, lane_tile=None):
    """CrossEntropyLoss(fuse.permute(0,2,1)[gt>0], gt[gt>0]-1), mean reduction."""
    B, K, V = fuse.shape

    if lane_tile is None:
        # ~2 MiB per fuse buffer, capped at 4096 lanes, multiple of 128.
        cols = max(128, min(4096, (524288 // max(K, 1)) // 128 * 128))
        vt = V if V <= cols else cols
    else:
        vt = lane_tile
    assert vt == V or vt % 128 == 0, "lane tile must be V or a multiple of 128"

    nv = pl.cdiv(V, vt)
    gt3 = gt.reshape(B, 1, V).astype(jnp.int32)     # free relayout (metadata only)

    kernel = functools.partial(_masked_ce_kernel,
                               v_total=V, mask_cols=(V % vt != 0))

    loss_sum, count = pl.pallas_call(
        kernel,
        out_shape=(jax.ShapeDtypeStruct((B, 1, 1), jnp.float32),
                   jax.ShapeDtypeStruct((B, 1, 1), jnp.int32)),
        grid_spec=pltpu.PrefetchScalarGridSpec(
            num_scalar_prefetch=0,
            grid=(B, nv),
            in_specs=[pl.BlockSpec((1, K, vt), lambda b, v: (b, 0, v)),
                      pl.BlockSpec((1, 1, vt), lambda b, v: (b, 0, v))],
            out_specs=(pl.BlockSpec((1, 1, 1), lambda b, v: (b, 0, 0)),
                       pl.BlockSpec((1, 1, 1), lambda b, v: (b, 0, 0))),
            scratch_shapes=[pltpu.VMEM((1, vt), jnp.float32),
                            pltpu.VMEM((1, vt), jnp.int32)],
        ),
        compiler_params=pltpu.CompilerParams(
            dimension_semantics=("parallel", "arbitrary"),
            vmem_limit_bytes=_VMEM_LIMIT),
    )(fuse, gt3)

    # NOTE: if no label > 0 this divides by zero (NaN) -- matches the PyTorch
    # CrossEntropyLoss behavior on an empty selection.
    return jnp.sum(loss_sum) / jnp.sum(count).astype(jnp.float32)


# ---------------------------------------------------------------------------
# Kernel 2: sum of squared differences (MSE numerator) per tensor pair
# ---------------------------------------------------------------------------
def _sqdiff_kernel(a_ref, b_ref, out_ref, acc_ref, *, rows, cols,
                   mask_rows, mask_cols):
    i = pl.program_id(0)
    j = pl.program_id(1)

    @pl.when(j == 0)
    def _init():
        acc_ref[...] = jnp.zeros_like(acc_ref)

    a = a_ref[...].astype(jnp.float32)
    b = b_ref[...].astype(jnp.float32)
    rt, ct = a.shape
    d = a - b
    if mask_rows or mask_cols:                      # static flags -> no cost otherwise
        ok = None
        if mask_rows:
            r = jax.lax.broadcasted_iota(jnp.int32, (rt, ct), 0) + i * rt
            ok = r < rows
        if mask_cols:
            c = jax.lax.broadcasted_iota(jnp.int32, (rt, ct), 1) + j * ct
            cm = c < cols
            ok = cm if ok is None else (ok & cm)
        d = jnp.where(ok, d, 0.0)
    acc_ref[...] += d * d                           # tile-shaped VPU accumulate

    @pl.when(j == pl.num_programs(1) - 1)
    def _fin():
        out_ref[...] = jnp.sum(acc_ref[...]).reshape(1, 1, 1)


def _as_2d(x):
    """Free (metadata-only) reshape to the most lane-dense 2D view available."""
    n = x.size
    for lane in (2048, 1024, 512, 256, 128):
        if n % lane == 0:
            return x.reshape(n // lane, lane)
    return x.reshape(-1, x.shape[-1])


def squared_diff_sum(a, b, row_tile=None, lane_tile=None):
    """sum((a - b)**2) over all elements, as a Pallas reduction."""
    assert a.shape == b.shape
    a2 = _as_2d(a)
    b2 = _as_2d(b)
    R, C = a2.shape

    if lane_tile is None:
        ct = min(C, 2048) if C % 128 == 0 else C
    else:
        ct = lane_tile
    if row_tile is None:
        if R % 8 == 0:
            rt = min(R, 256)
        else:
            rt = R if R <= 1024 else 256
    else:
        rt = row_tile
    assert ct == C or ct % 128 == 0
    assert rt == R or rt % 8 == 0

    nr = pl.cdiv(R, rt)
    nc = pl.cdiv(C, ct)
    kernel = functools.partial(_sqdiff_kernel, rows=R, cols=C,
                               mask_rows=(R % rt != 0), mask_cols=(C % ct != 0))

    partials = pl.pallas_call(
        kernel,
        out_shape=jax.ShapeDtypeStruct((nr, 1, 1), jnp.float32),
        grid_spec=pltpu.PrefetchScalarGridSpec(
            num_scalar_prefetch=0,
            grid=(nr, nc),
            in_specs=[pl.BlockSpec((rt, ct), lambda i, j: (i, j)),
                      pl.BlockSpec((rt, ct), lambda i, j: (i, j))],
            out_specs=pl.BlockSpec((1, 1, 1), lambda i, j: (i, 0, 0)),
            scratch_shapes=[pltpu.VMEM((rt, ct), jnp.float32)],
        ),
        compiler_params=pltpu.CompilerParams(
            dimension_semantics=("parallel", "arbitrary"),
            vmem_limit_bytes=_VMEM_LIMIT),
    )(a2, b2)
    return jnp.sum(partials)


# ---------------------------------------------------------------------------
# Module forward
# ---------------------------------------------------------------------------
def ce_const_loss_forward(fuse, gt, origin, recon, lam_feat):
    loss_ce = masked_cross_entropy(fuse, gt)

    # MSE over cat(origin) vs cat(recon) == (sum of per-pair sq-diff) / total N.
    # Running per pair avoids the two full-HBM concatenate passes.
    total_sq = jnp.float32(0.0)
    total_n = 0
    for o, r in zip(origin, recon):
        total_sq = total_sq + squared_diff_sum(o, r)
        total_n += o.size
    loss_feat = total_sq / jnp.float32(total_n)

    loss = loss_ce + lam_feat * loss_feat
    return loss, loss_ce, loss_feat


# ---------------------------------------------------------------------------
# Pure-JAX reference for a sanity check
# ---------------------------------------------------------------------------
def _reference(fuse, gt, origin, recon, lam_feat):
    B, K, V = fuse.shape
    logits = jnp.transpose(fuse, (0, 2, 1))                # (B, V, K)
    mask = gt > 0
    lse = jax.nn.logsumexp(logits, axis=-1)
    tgt = jnp.clip(gt - 1, 0, K - 1)
    tl = jnp.take_along_axis(logits, tgt[..., None], axis=-1)[..., 0]
    per = lse - tl
    ce = jnp.sum(jnp.where(mask, per, 0.0)) / jnp.sum(mask)
    o = jnp.concatenate(origin, axis=1)
    r = jnp.concatenate(recon, axis=1)
    feat = jnp.mean((o - r) ** 2)
    return ce + lam_feat * feat, ce, feat


if __name__ == "__main__":
    key = jax.random.PRNGKey(0)
    k1, k2, k3, k4, k5, k6 = jax.random.split(key, 6)

    B, K, V = 2, 6, 320                                    # K classes (labels 1..K, 0 ignore)
    lam_feat = 0.5

    fuse = jax.random.normal(k1, (B, K, V), jnp.float32)
    gt = jax.random.randint(k2, (B, V), 0, K + 1, dtype=jnp.int32)
    gt = gt.at[0, 0].set(3)                                # guarantee >=1 valid position

    # origin / recon: lists of (B, Ci, V) feature maps, M=2 with C = (3, 5)
    origin = [jax.random.normal(k3, (B, 3, V), jnp.float32),
              jax.random.normal(k4, (B, 5, V), jnp.float32)]
    recon = [jax.random.normal(k5, (B, 3, V), jnp.float32),
             jax.random.normal(k6, (B, 5, V), jnp.float32)]

    loss, loss_ce, loss_feat = ce_const_loss_forward(fuse, gt, origin, recon, lam_feat)
    jax.block_until_ready((loss, loss_ce, loss_feat))

    rl, rce, rfeat = _reference(fuse, gt, origin, recon, lam_feat)
    assert jnp.allclose(loss_ce, rce, atol=1e-4, rtol=1e-4), (loss_ce, rce)
    assert jnp.allclose(loss_feat, rfeat, atol=1e-4, rtol=1e-4), (loss_feat, rfeat)
    assert jnp.allclose(loss, rl, atol=1e-4, rtol=1e-4), (loss, rl)

    # Exercise the multi-tile + masked-tail code paths explicitly.
    ce_tiled = masked_cross_entropy(fuse, gt, lane_tile=128)   # 3 tiles, tail masked
    jax.block_until_ready(ce_tiled)
    assert jnp.allclose(ce_tiled, rce, atol=1e-4, rtol=1e-4), (ce_tiled, rce)

    sq_tiled = squared_diff_sum(origin[0], recon[0], row_tile=8)  # row-tail masked
    jax.block_until_ready(sq_tiled)
    sq_ref = jnp.sum((origin[0] - recon[0]) ** 2)
    assert jnp.allclose(sq_tiled, sq_ref, atol=1e-3, rtol=1e-4), (sq_tiled, sq_ref)

    print("KERNEL_OK")
</pallas_src>

<mosaic_0001>
module attributes {stable_mosaic.version = 11 : i64} {
  func.func @_masked_ce_kernel(%arg0: i32, %arg1: i32, %arg2: memref<1x6x320xf32, #tpu.memory_space<vmem>>, %arg3: memref<1x1x320xi32, #tpu.memory_space<vmem>>, %arg4: memref<1x1x1xf32, #tpu.memory_space<vmem>>, %arg5: memref<1x1x1xi32, #tpu.memory_space<vmem>>, %arg6: memref<1x320xf32, #tpu.memory_space<vmem>>, %arg7: memref<1x320xi32, #tpu.memory_space<vmem>>) attributes {dimension_semantics = [#tpu.dimension_semantics<parallel>, #tpu.dimension_semantics<arbitrary>], iteration_bounds = array<i64: 2, 1>, scalar_prefetch = 0 : i64, scratch_operands = 2 : i64, tpu.core_type = #tpu.core_type<tc>, window_params = [{transform_indices = @transform_0, window_bounds = array<i64: 1, 6, 320>}, {transform_indices = @transform_1, window_bounds = array<i64: 1, 1, 320>}, {transform_indices = @transform_2, window_bounds = array<i64: 1, 1, 1>}, {transform_indices = @transform_3, window_bounds = array<i64: 1, 1, 1>}]} {
    %c0_i32 = arith.constant 0 : i32
    %0 = arith.cmpi eq, %arg1, %c0_i32 : i32
    %1 = arith.extui %0 : i1 to i32
    %c0_i32_0 = arith.constant 0 : i32
    %2 = arith.cmpi ne, %1, %c0_i32_0 : i32
    scf.if %2 {
      %cst_21 = arith.constant 0.000000e+00 : f32
      %40 = vector.broadcast %cst_21 : f32 to vector<1x320xf32>
      %c0_22 = arith.constant 0 : index
      %c0_23 = arith.constant 0 : index
      %41 = vector.load %arg6[%c0_22, %c0_23] : memref<1x320xf32, #tpu.memory_space<vmem>>, vector<1x320xf32>
      tpu.vector_store %arg6[%c0_22, %c0_23], %40 {strides = array<i32>} : memref<1x320xf32, #tpu.memory_space<vmem>>, vector<1x320xf32>,
      %c0_i32_24 = arith.constant 0 : i32
      %42 = vector.broadcast %c0_i32_24 : i32 to vector<1x320xi32>
      %c0_25 = arith.constant 0 : index
      %c0_26 = arith.constant 0 : index
      %43 = vector.load %arg7[%c0_25, %c0_26] : memref<1x320xi32, #tpu.memory_space<vmem>>, vector<1x320xi32>
      tpu.vector_store %arg7[%c0_25, %c0_26], %42 {strides = array<i32>} : memref<1x320xi32, #tpu.memory_space<vmem>>, vector<1x320xi32>,
    } else {
    }
    %c0 = arith.constant 0 : index
    %c0_1 = arith.constant 0 : index
    %c0_2 = arith.constant 0 : index
    %3 = vector.load %arg2[%c0, %c0_1, %c0_2] : memref<1x6x320xf32, #tpu.memory_space<vmem>>, vector<1x6x320xf32>
    %4 = vector.shape_cast %3 : vector<1x6x320xf32> to vector<6x320xf32>
    %c0_3 = arith.constant 0 : index
    %c0_4 = arith.constant 0 : index
    %c0_5 = arith.constant 0 : index
    %5 = vector.load %arg3[%c0_3, %c0_4, %c0_5] : memref<1x1x320xi32, #tpu.memory_space<vmem>>, vector<1x1x320xi32>
    %6 = vector.shape_cast %5 : vector<1x1x320xi32> to vector<1x320xi32>
    %cst = arith.constant dense<0xFF800000> : vector<320xf32>
    %7 = vector.multi_reduction <maximumf>, %4, %cst [0] : vector<6x320xf32> to vector<320xf32>
    %8 = vector.shape_cast %7 : vector<320xf32> to vector<1x320xf32>
    %9 = vector.broadcast %8 : vector<1x320xf32> to vector<6x320xf32>
    %10 = arith.subf %4, %9 : vector<6x320xf32>
    %11 = math.exp %10 : vector<6x320xf32>
    %cst_6 = arith.constant dense<0.000000e+00> : vector<320xf32>
    %12 = vector.multi_reduction <add>, %11, %cst_6 [0] : vector<6x320xf32> to vector<320xf32>
    %13 = vector.shape_cast %12 : vector<320xf32> to vector<1x320xf32>
    %14 = math.log %13 : vector<1x320xf32>
    %15 = arith.addf %8, %14 : vector<1x320xf32>
    %16 = tpu.iota {dimensions = array<i32: 0>} : vector<6x320xi32>
    %c1_i32 = arith.constant 1 : i32
    %17 = vector.broadcast %c1_i32 : i32 to vector<1x320xi32>
    %18 = arith.subi %6, %17 : vector<1x320xi32>
    %19 = vector.broadcast %18 : vector<1x320xi32> to vector<6x320xi32>
    %20 = arith.cmpi eq, %16, %19 : vector<6x320xi32>
    %cst_7 = arith.constant 0.000000e+00 : f32
    %21 = vector.broadcast %cst_7 : f32 to vector<6x320xf32>
    %22 = arith.select %20, %4, %21 : vector<6x320xi1>, vector<6x320xf32>
    %cst_8 = arith.constant dense<0.000000e+00> : vector<320xf32>
    %23 = vector.multi_reduction <add>, %22, %cst_8 [0] : vector<6x320xf32> to vector<320xf32>
    %24 = vector.shape_cast %23 : vector<320xf32> to vector<1x320xf32>
    %c0_i32_9 = arith.constant 0 : i32
    %25 = vector.broadcast %c0_i32_9 : i32 to vector<1x320xi32>
    %26 = arith.cmpi sgt, %6, %25 : vector<1x320xi32>
    %27 = arith.subf %15, %24 : vector<1x320xf32>
    %cst_10 = arith.constant 0.000000e+00 : f32
    %28 = vector.broadcast %cst_10 : f32 to vector<1x320xf32>
    %29 = arith.select %26, %27, %28 : vector<1x320xi1>, vector<1x320xf32>
    %c0_11 = arith.constant 0 : index
    %c0_12 = arith.constant 0 : index
    %30 = vector.load %arg6[%c0_11, %c0_12] : memref<1x320xf32, #tpu.memory_space<vmem>>, vector<1x320xf32>
    %31 = arith.addf %30, %29 : vector<1x320xf32>
    %c0_13 = arith.constant 0 : index
    %c0_14 = arith.constant 0 : index
    %32 = vector.load %arg6[%c0_13, %c0_14] : memref<1x320xf32, #tpu.memory_space<vmem>>, vector<1x320xf32>
    tpu.vector_store %arg6[%c0_13, %c0_14], %31 {strides = array<i32>} : memref<1x320xf32, #tpu.memory_space<vmem>>, vector<1x320xf32>,
    %c0_15 = arith.constant 0 : index
    %c0_16 = arith.constant 0 : index
    %33 = vector.load %arg7[%c0_15, %c0_16] : memref<1x320xi32, #tpu.memory_space<vmem>>, vector<1x320xi32>
    %34 = arith.extui %26 : vector<1x320xi1> to vector<1x320xi32>
    %35 = arith.addi %33, %34 : vector<1x320xi32>
    %c0_17 = arith.constant 0 : index
    %c0_18 = arith.constant 0 : index
    %36 = vector.load %arg7[%c0_17, %c0_18] : memref<1x320xi32, #tpu.memory_space<vmem>>, vector<1x320xi32>
    tpu.vector_store %arg7[%c0_17, %c0_18], %35 {strides = array<i32>} : memref<1x320xi32, #tpu.memory_space<vmem>>, vector<1x320xi32>,
    %c0_i32_19 = arith.constant 0 : i32
    %37 = arith.cmpi eq, %arg1, %c0_i32_19 : i32
    %38 = arith.extui %37 : i1 to i32
    %c0_i32_20 = arith.constant 0 : i32
    %39 = arith.cmpi ne, %38, %c0_i32_20 : i32
    scf.if %39 {
      %c0_21 = arith.constant 0 : index
      %c0_22 = arith.constant 0 : index
      %40 = vector.load %arg6[%c0_21, %c0_22] : memref<1x320xf32, #tpu.memory_space<vmem>>, vector<1x320xf32>
      %41 = vector.shape_cast %40 : vector<1x320xf32> to vector<1x1x320xf32>
      %cst_23 = arith.constant dense<0.000000e+00> : vector<1xf32>
      %42 = vector.multi_reduction <add>, %41, %cst_23 [1, 2] : vector<1x1x320xf32> to vector<1xf32>
      %43 = vector.shape_cast %42 : vector<1xf32> to vector<1x1x1xf32>
      %44 = vector.extract %43[0, 0, 0] : f32 from vector<1x1x1xf32>
      %45 = vector.broadcast %44 : f32 to vector<1x1x1xf32>
      %c0_24 = arith.constant 0 : index
      %c0_25 = arith.constant 0 : index
      %c0_26 = arith.constant 0 : index
      %46 = vector.load %arg4[%c0_24, %c0_25, %c0_26] : memref<1x1x1xf32, #tpu.memory_space<vmem>>, vector<1x1x1xf32>
      tpu.vector_store %arg4[%c0_24, %c0_25, %c0_26], %45 {strides = array<i32>} : memref<1x1x1xf32, #tpu.memory_space<vmem>>, vector<1x1x1xf32>,
      %c0_27 = arith.constant 0 : index
      %c0_28 = arith.constant 0 : index
      %47 = vector.load %arg7[%c0_27, %c0_28] : memref<1x320xi32, #tpu.memory_space<vmem>>, vector<1x320xi32>
      %48 = vector.shape_cast %47 : vector<1x320xi32> to vector<1x1x320xi32>
      %cst_29 = arith.constant dense<0> : vector<1xi32>
      %49 = vector.multi_reduction <add>, %48, %cst_29 [1, 2] : vector<1x1x320xi32> to vector<1xi32>
      %50 = vector.shape_cast %49 : vector<1xi32> to vector<1x1x1xi32>
      %51 = vector.extract %50[0, 0, 0] : i32 from vector<1x1x1xi32>
      %52 = vector.broadcast %51 : i32 to vector<1x1x1xi32>
      %c0_30 = arith.constant 0 : index
      %c0_31 = arith.constant 0 : index
      %c0_32 = arith.constant 0 : index
      %53 = vector.load %arg5[%c0_30, %c0_31, %c0_32] : memref<1x1x1xi32, #tpu.memory_space<vmem>>, vector<1x1x1xi32>
      tpu.vector_store %arg5[%c0_30, %c0_31, %c0_32], %52 {strides = array<i32>} : memref<1x1x1xi32, #tpu.memory_space<vmem>>, vector<1x1x1xi32>,
    } else {
    }
    return
  }
  func.func @transform_0(%arg0: i32, %arg1: i32) -> (i32, i32, i32) {
    %c0_i32 = arith.constant 0 : i32
    %c0_i32_0 = arith.constant 0 : i32
    return %arg0, %c0_i32, %arg1 : i32, i32, i32
  }
  func.func @transform_1(%arg0: i32, %arg1: i32) -> (i32, i32, i32) {
    %c0_i32 = arith.constant 0 : i32
    %c0_i32_0 = arith.constant 0 : i32
    return %arg0, %c0_i32, %arg1 : i32, i32, i32
  }
  func.func @transform_2(%arg0: i32, %arg1: i32) -> (i32, i32, i32) {
    %c0_i32 = arith.constant 0 : i32
    %c0_i32_0 = arith.constant 0 : i32
    %c0_i32_1 = arith.constant 0 : i32
    return %arg0, %c0_i32, %c0_i32_0 : i32, i32, i32
  }
  func.func @transform_3(%arg0: i32, %arg1: i32) -> (i32, i32, i32) {
    %c0_i32 = arith.constant 0 : i32
    %c0_i32_0 = arith.constant 0 : i32
    %c0_i32_1 = arith.constant 0 : i32
    return %arg0, %c0_i32, %c0_i32_0 : i32, i32, i32
  }
}

</mosaic_0001>

<bundles_post_ra>
// kernel: tpu_custom_call.1
= control target key start
LH: loop header
LB: loop body
LE: loop exit
PB: predicated region body
PF: predicated region fallthrough
CT: control target
= control target key end

     0   :  { %s678_s12 = smov 0   ;;  %s680_s13 = smov 0   ;;  %s827_s0 = inlined_call_operand.vmem [shape: f32[2,6,320], index: 0, kind: input, shape index: {}]   ;;  %s828_s1 = inlined_call_operand.vmem [shape: s32[2,1,320], index: 1, kind: input, shape index: {}]   ;;  %s829_s2 = inlined_call_operand.vmem [shape: f32[2,1,1], index: 2, kind: output, shape index: {0}]   ;;  %s830_s3 = inlined_call_operand.vmem [shape: s32[2,1,1], index: 3, kind: output, shape index: {1}]  }
   0x1   :  { %s682_s14 = smov 0  }
   0x2 LB: > { %s26_s15 = sadd.s32 1, %s649_s13  ;;  %p581_p0 = scmp.ge.s32.totalorder %s653_s14, 1  ;;  %s653_s14 = sphi %s682_s14, %s14_s14   ;;  %s649_s13 = sphi %s680_s13, %s840_s13   ;;  %s645_s12 = sphi %s678_s12, %s839_s12  }
   0x3   : > { %p28_p1 = scmp.ge.s32.totalorder %s26_s15, 2  ;;  %p175_p2 = scmp.lt.s32.totalorder %s653_s14, 3 }
   0x5   : > { %s842_s15 = smov (%p28_p1, %s26_s15), 0  ;;  %p176_p3 = pnand %p581_p0, %p175_p2 }
   0x6   : > { %p213_p4 = scmp.lt.s32.totalorder (!%p176_p3), %s645_s12, 1 }
   0x7   : > { %179 = sbr.rel (%p176_p3) target bundleno = 312 (0x138), region = 28 }
   0xc   : > { %v241_v0 = vlaneseq  ;;  %s844_s12 = smov (!%p213_p4, %s645_s12), 1  ;;  %v655_v2 = vmov 0.0   ;;  %v656_v3 = vmov 0   ;;  %vm251_vm1 = vcmask 1045504  }
   0xd   : > { %s587_s16 = smul.u32 3, %s844_s12  ;;  %vm266_vm2 = vcmask 521216   ;;  %vm418_vm4 = vcmask 1040384   ;;  %vm422_vm5 = vcmask 516096   ;;  %s233_s26 = scalar_lea.vmem %s829_s2, %s844_s12  ;;  %vm435_vm9 = vcmask 0  }
   0xe   : > { %vm698_vm0 = vcmp.lt.s32.totalorder %v241_v0, 320  ;;  %s586_s17 = smul.u32 24, %s844_s12  ;;  %v733_v22 = vshrl.u32 %v241_v0, 7  ;;  %s236_s30 = scalar_lea.vmem %s830_s3, %s844_s12 }
   0xf   : > { %245 = vst.msk [vmem:[#allocation2] sm:$0x7] %vm698_vm0, %v655_v2  ;;  %246 = vst.msk [vmem:[#allocation3] sm:$0x7] %vm698_vm0, %v656_v3  ;;  %s229_s20 = scalar_lea.vmem %s828_s1, %s587_s16 }
  0x10   : > { %v711_v4 = vld [vmem:[%s229_s20] sm:$0x7]  ;;  %s220_s23 = scalar_lea.vmem %s827_s0, %s586_s17  ;;  %v736_v29 = vsub.s32 0, %v733_v22  ;;  %v739_v30 = vsub.s32 1, %v733_v22  ;;  %v742_v31 = vsub.s32 2, %v733_v22 }
  0x11   : > { %vm355_vm3 = vcmp.gt.s32.totalorder %v711_v4, 0  ;;  %v717_v5 = vld [vmem:[%s220_s23] sm:$0x3f]  ;;  %v719_v6 = vld [vmem:[%s220_s23 + $0x8] sm:$0x3f]  ;;  %v583_v54 = vadd.s32 4294967295, %v711_v4 }
  0x12   : > { %v395_v7 = vsel %vm355_vm3, 1, %v656_v3  ;;  %v723_v8 = vld [vmem:[%s220_s23 + $0x10] sm:$0x3f]  ;;  %v252_v9 = vsel %vm251_vm1, %v717_v5, -inf  ;;  %v259_v10 = vsel %vm251_vm1, %v719_v6, -inf }
  0x13   : > { %v253_v12 = vrot.slane %v252_v9, 4  ;;  %v260_v13 = vrot.slane %v259_v10, 4  ;;  %v267_v15 = vsel %vm266_vm2, %v723_v8, -inf  ;;  %v319_v56 = vrot.slane %v583_v54, %v736_v29 }
  0x14   : > { %v268_v18 = vrot.slane %v267_v15, 4  ;;  %v323_v57 = vrot.slane %v583_v54, %v739_v30  ;;  %v327_v58 = vrot.slane %v583_v54, %v742_v31 }
  0x15   : > { %v254_v16 = vmax.f32 %v252_v9, %v253_v12  ;;  %v261_v17 = vmax.f32 %v259_v10, %v260_v13  ;;  %vm767_vm6 = vcmp.eq.s32.totalorder %v733_v22, %v319_v56 }
  0x16   : > { %v394_v11 = vld [vmem:[#allocation3] sm:$0x7]  ;;  %v269_v21 = vmax.f32 %v267_v15, %v268_v18  ;;  %vm772_vm7 = vcmp.eq.s32.totalorder %v733_v22, %v323_v57  ;;  %vm778_vm8 = vcmp.eq.s32.totalorder %v733_v22, %v327_v58  ;;  %v331_v9 = vsel %vm767_vm6, %v717_v5, 0.0 }
  0x17   : > { %v396_v14 = vadd.s32 %v395_v7, %v394_v11  ;;  %v255_v19 = vrot.slane %v254_v16, 2  ;;  %v262_v20 = vrot.slane %v261_v17, 2  ;;  %v332_v12 = vsel %vm772_vm7, %v719_v6, 0.0 }
  0x18   : > { %v270_v25 = vrot.slane %v269_v21, 2  ;;  %v333_v15 = vsel %vm778_vm8, %v723_v8, 0.0 }
  0x19   : > { %397 = vst.msk [vmem:[#allocation3] sm:$0x7] %vm698_vm0, %v396_v14  ;;  %v256_v23 = vmax.f32 %v254_v16, %v255_v19  ;;  %v263_v24 = vmax.f32 %v261_v17, %v262_v20  ;;  %v334_v17 = vsel %vm251_vm1, %v331_v9, 0.0 }
  0x1a   : > { %v271_v28 = vmax.f32 %v269_v21, %v270_v25  ;;  %v348_v21 = vsel %vm266_vm2, %v333_v15, 0.0  ;;  %v335_v25 = vrot.slane %v334_v17, 4 }
  0x1b   : > { %v257_v26 = vrot.slane %v256_v23, 1  ;;  %v264_v27 = vrot.slane %v263_v24, 1 }
  0x1c   : > { %v272_v35 = vrot.slane %v271_v28, 1 }
  0x1d   : > { %v744_v33 = vmax.f32 %v256_v23, %v257_v26  ;;  %v746_v34 = vmax.f32 %v263_v24, %v264_v27 }
  0x1e   : > { %v751_v39 = vmax.f32 %v271_v28, %v272_v35 }
  0x1f   : > { %v274_v40 = vsub.f32 %v717_v5, %v744_v33  ;;  %v275_v41 = vsub.f32 %v719_v6, %v746_v34  ;;  %v341_v5 = vsel %vm251_vm1, %v332_v12, 0.0 }
  0x20   : > { %v437_v32 = vld [vmem:[#allocation3] sm:$0x7]  ;;  %v276_v46 = vsub.f32 %v723_v8, %v751_v39  ;;  %v342_v26 = vrot.slane %v341_v5, 4 }
  0x21   : > { %v441_v36 = vrot.slane %v437_v32, %v736_v29  ;;  %v445_v37 = vrot.slane %v437_v32, %v739_v30  ;;  %v449_v38 = vrot.slane %v437_v32, %v742_v31  ;;  %v277_v47 = vmul.f32 1.442695, %v274_v40 }
  0x22   : > { %v279_v48 = vmul.f32 1.442695, %v275_v41  ;;  %v281_v50 = vmul.f32 1.442695, %v276_v46  ;;  %v349_v32 = vrot.slane %v348_v21, 4  ;;  %v343_v40 = vadd.f32 %v342_v26, %v341_v5 }
  0x23   : > { %v450_v42 = vsel %vm418_vm4, %v441_v36, 0  ;;  %v451_v43 = vsel %vm418_vm4, %v445_v37, 0  ;;  %v452_v44 = vsel %vm422_vm5, %v449_v38, 0  ;;  %619 = vpow2.f32 %v277_v47 }
  0x24   : > { %v453_v45 = vadd.s32 %v451_v43, %v450_v42  ;;  %621 = vpow2.f32 %v279_v48  ;;  %v336_v37 = vadd.f32 %v335_v25, %v334_v17  ;;  %v350_v42 = vadd.f32 %v349_v32, %v348_v21 }
  0x25   : > { %623 = vpow2.f32 %v281_v50 }
  0x26   : > { %v454_v49 = vadd.s32 %v453_v45, %v452_v44  ;;  %v337_v43 = vrot.slane %v336_v37, 2  ;;  %v344_v44 = vrot.slane %v343_v40, 2  ;;  %v351_v45 = vrot.slane %v350_v42, 2 }
  0x28   : > { %v456_v51 = vshrl.u32 %v454_v49, 16  ;;  %v455_v52 = vand.u32 65535, %v454_v49  ;;  %v338_v46 = vadd.f32 %v337_v43, %v336_v37  ;;  %v345_v47 = vadd.f32 %v344_v44, %v343_v40 }
  0x29   : > { %v352_v48 = vadd.f32 %v351_v45, %v350_v42  ;;  %v657_v49 = vmov 1966171168  }
  0x2a   : > { %v458_v53 = vcvt.s32.f32 %v456_v51  ;;  %v457_v55 = vcvt.s32.f32 %v455_v52  ;;  %v364_v50 = vunpack.c.l.s4 %v657_v49  ;;  %v339_v51 = vrot.slane %v338_v46, 1 }
  0x2b   : > { %v346_v52 = vrot.slane %v345_v47, 1 }
  0x2c   : > { %461 = vadd.xlane.f32.xlu0 %v458_v53  ;;  %v353_v53 = vrot.slane %v352_v48, 1  ;;  %v365_v56 = vunpack.c.0.s8 %v364_v50  ;;  %v340_v58 = vadd.f32 %v339_v51, %v338_v46 }
  0x2d   : > { %v347_v61 = vadd.f32 %v346_v52, %v345_v47 }
  0x2e   : > { %v354_v0 = vadd.f32 %v353_v53, %v352_v48 }
  0x30   : > { %459 = vadd.xlane.f32.xlu0 %v457_v55  ;;  %v620_v60 = vpop.eup %619 }
  0x31   : > { %v622_v62 = vpop.eup %621  ;;  %v283_v63 = vsel %vm251_vm1, %v620_v60, 0.0 }
  0x32   : > { %v624_v2 = vpop.eup %623  ;;  %v284_v3 = vrot.slane %v283_v63, 4  ;;  %v290_v7 = vsel %vm251_vm1, %v622_v62, 0.0 }
  0x33   : > { %v291_v10 = vrot.slane %v290_v7, 4  ;;  %v297_v11 = vsel %vm266_vm2, %v624_v2, 0.0 }
  0x34   : > { %v285_v13 = vadd.f32 %v284_v3, %v283_v63  ;;  %v298_v14 = vrot.slane %v297_v11, 4  ;;  %v368_v3 = vsub.s32 %v365_v56, %v733_v22 }
  0x35   : > { %v292_v16 = vadd.f32 %v291_v10, %v290_v7 }
  0x36   : > { %v286_v18 = vrot.slane %v285_v13, 2  ;;  %v299_v19 = vadd.f32 %v298_v14, %v297_v11 }
  0x37   : > { %v293_v20 = vrot.slane %v292_v16, 2 }
  0x38   : > { %v287_v23 = vadd.f32 %v286_v18, %v285_v13  ;;  %v300_v24 = vrot.slane %v299_v19, 2 }
  0x39   : > { %v294_v6 = vadd.f32 %v293_v20, %v292_v16  ;;  %v387_v16 = vld [vmem:[#allocation2] sm:$0x7] }
  0x3a   : > { %v288_v27 = vrot.slane %v287_v23, 1  ;;  %v301_v28 = vadd.f32 %v300_v24, %v299_v19 }
  0x3b   : > { %v295_v35 = vrot.slane %v294_v6, 1 }
  0x3c   : > { %v289_v8 = vadd.f32 %v288_v27, %v287_v23  ;;  %v302_v36 = vrot.slane %v301_v28, 1 }
  0x3d   : > { %v296_v38 = vadd.f32 %v295_v35, %v294_v6 }
  0x3e   : > { %v303_v41 = vadd.f32 %v302_v36, %v301_v28  ;;  %625 = vlog2.f32 %v289_v8 }
  0x3f   : > { %627 = vlog2.f32 %v296_v38 }
  0x40   : > { %629 = vlog2.f32 %v303_v41 }
  0x4b   : > { %v626_v54 = vpop.eup %625 }
  0x4c   : > { %v628_v55 = vpop.eup %627  ;;  %v305_v57 = vmul.f32 0.6931472, %v626_v54 }
  0x4d   : > { %v630_v59 = vpop.eup %629  ;;  %v307_v60 = vmul.f32 0.6931472, %v628_v55 }
  0x4e   : > { %v309_v62 = vmul.f32 0.6931472, %v630_v59  ;;  %v310_v63 = vadd.f32 %v305_v57, %v744_v33 }
  0x4f   : > { %v311_v2 = vadd.f32 %v307_v60, %v746_v34 }
  0x50   : > { %v312_v7 = vadd.f32 %v309_v62, %v751_v39  ;;  %v356_v9 = vsub.f32 %v310_v63, %v340_v58 }
  0x51   : > { %v357_v10 = vsub.f32 %v311_v2, %v347_v61 }
  0x52   : > { %v358_v11 = vsub.f32 %v312_v7, %v354_v0 }
  0x53   : > { %v362_v12 = vcombine.low %v356_v9, %v357_v10 }
  0x54   : > { %v376_v13 = vrot.slane %v358_v11, %v368_v3 }
  0x55   : > { %v369_v14 = vrot.slane %v362_v12, %v368_v3 }
  0x57   : > { %v377_v15 = vcombine.low %v369_v14, %v376_v13 }
  0x59   : > { %v384_v17 = vrot.slane %v377_v15, %v368_v3 }
  0x5b   : > { %v386_v18 = vsel %vm355_vm3, %v384_v17, 0.0 }
  0x5c   : > { %v388_v33 = vadd.f32 %v387_v16, %v386_v18 }
  0x5e   : > { %393 = vst.msk [vmem:[#allocation2] sm:$0x7] %vm698_vm0, %v388_v33 }
  0x65   : > { %v401_v34 = vld [vmem:[#allocation2] sm:$0x7] }
  0x66   : > { %v406_v22 = vrot.slane %v401_v34, %v736_v29  ;;  %v410_v39 = vrot.slane %v401_v34, %v739_v30  ;;  %v414_v19 = vrot.slane %v401_v34, %v742_v31 }
  0x68   : > { %v419_v5 = vsel %vm418_vm4, %v406_v22, 0.0  ;;  %v420_v20 = vsel %vm418_vm4, %v410_v39, 0.0  ;;  %v423_v21 = vsel %vm422_vm5, %v414_v19, 0.0 }
  0x69   : > { %v421_v23 = vadd.f32 %v420_v20, %v419_v5 }
  0x6b   : > { %v424_v4 = vadd.f32 %v423_v21, %v421_v23 }
  0x6d   : > { %425 = vadd.xlane.f32.xlu1 %v424_v4 }
  0xb5   : > { %v462_v24 = vpop.xlane.xlu0 %461 }
  0xb6   : > { %v464_v25 = vcvt.f32.s32 %v462_v24 }
  0xb8   : > { %v465_v6 = vshll.u32 %v464_v25, 16 }
  0xb9   : > { %v460_v1 = vpop.xlane.xlu0 %459 }
  0xba   : > { %v463_v26 = vcvt.f32.s32 %v460_v1 }
  0xbc   : > { %v466_v27 = vadd.s32 %v465_v6, %v463_v26 }
  0xbe   : > { %v467_v29 = vrot.slane %v466_v27, 4 }
  0xc0   : > { %v468_v30 = vadd.s32 %v467_v29, %v466_v27 }
  0xc2   : > { %v469_v31 = vrot.slane %v468_v30, 2 }
  0xc4   : > { %v470_v8 = vadd.s32 %v469_v31, %v468_v30 }
  0xc6   : > { %v471_v38 = vrot.slane %v470_v8, 1 }
  0xc8   : > { %v472_v42 = vadd.s32 %v471_v38, %v470_v8 }
  0xf6   : > { %v426_v28 = vpop.xlane.xlu1 %425 }
  0xf7   : > { %v427_v32 = vrot.slane %v426_v28, 4 }
  0xf9   : > { %v428_v35 = vadd.f32 %v427_v32, %v426_v28 }
  0xfb   : > { %v429_v36 = vrot.slane %v428_v35, 2 }
  0xfd   : > { %v430_v37 = vadd.f32 %v429_v36, %v428_v35 }
  0xff   : > { %v431_v40 = vrot.slane %v430_v37, 1 }
 0x101   : > { %v432_v41 = vadd.f32 %v431_v40, %v430_v37 }
 0x103   : > { %588 = vpush %v432_v41 }
 0x104   : > { %590 = vpush %v472_v42 }
 0x134   : > { %s589_s27 = spop %588 }
 0x135   : > { %v434_v43 = vstv %s589_s27  ;;  %s591_s4 = spop %590 }
 0x136   : > { %436 = vst.msk [vmem:[%s233_s26] sm:$0x1] %vm435_vm9, %v434_v43  ;;  %v474_v44 = vstv %s591_s4 }
 0x137   : > { %475 = vst.msk [vmem:[%s236_s30] sm:$0x1] %vm435_vm9, %v474_v44 }
 0x138 PF: > { %s14_s14 = sadd.s32 1, %s653_s14   ;;  %s839_s12 = smov %s649_s13 }
 0x139   : > { %p11_p5 = scmp.ge.s32.totalorder %s14_s14, 4   ;;  %s840_s13 = smov %s842_s15 }
 0x13b   :  { %13 = sbr.rel (!%p11_p5) target bundleno = 2 (0x2), region = 81 }

</bundles_post_ra>
